<compile_context>
chip_gen: v6e
topology: v6e:2x2x1
jax: 0.10.0
libtpu: 0.0.40
codegen_flags: <defaults>
</compile_context>

<pallas_src>
import jax
import jax.numpy as jnp
from jax.experimental import pallas as pl
from jax.experimental.pallas import tpu as pltpu


NUM_NODES = 128
F_IN, F_H1, F_H2, F_OUT = 4, 16, 8, 2


def gcn_net_kernel(adj_t_ref, xt_ref,
                   w1t_ref, b1t_ref,
                   w2t_ref, b2t_ref,
                   w3t_ref, b3t_ref,
                   out_ref):
    adj_t = adj_t_ref[...]                                # [N, N] bf16 (A_hat^T)

    def layer(h_t, w_t_ref, b_t_ref):
        # W^T @ H^T : tiny contraction (K = 4 / 16 / 8), keep f32.
        z = jnp.dot(w_t_ref[...], h_t, preferred_element_type=jnp.float32)
        # (W^T H^T) @ A_hat^T : the K=128 contraction -> bf16 MXU, f32 acc.
        z = jnp.dot(z.astype(jnp.bfloat16), adj_t,
                    preferred_element_type=jnp.float32)
        return z + b_t_ref[...]                           # bias: [Fo,1] bcast on lanes

    h = xt_ref[...]                                       # [4,  N] f32
    h = jnp.maximum(layer(h, w1t_ref, b1t_ref), 0.0)      # [16, N]
    h = jnp.maximum(layer(h, w2t_ref, b2t_ref), 0.0)      # [8,  N]
    h = layer(h, w3t_ref, b3t_ref)                        # [2,  N]

    # log_softmax over the class axis (2 sublanes) -- cheap, stays f32.
    m = jnp.max(h, axis=0, keepdims=True)                 # [1, N]
    s = h - m
    lse = jnp.log(jnp.sum(jnp.exp(s), axis=0, keepdims=True))
    out_ref[...] = s - lse                                # [2, N] lane-dense store


def gcn_net_forward(adj, x, params):
    """adj: [N,N] f32 normalized adjacency A_hat; x: [N,F_IN] f32."""
    (w1, b1), (w2, b2), (w3, b3) = params
    n = x.shape[0]
    n_cls = w3.shape[1]

    # Transposed, lane-dense operands (node axis -> lanes); adj^T pre-cast to
    # bf16 (halves its HBM->VMEM traffic and feeds the MXU natively).
    adj_t = adj.T.astype(jnp.bfloat16)                    # [N, N]
    x_t = x.T                                             # [F_IN, N]
    w1t, w2t, w3t = w1.T, w2.T, w3.T                      # [Fo, Fi]
    b1t = b1.reshape(-1, 1)                               # [Fo, 1]
    b2t = b2.reshape(-1, 1)
    b3t = b3.reshape(-1, 1)

    flops = 2 * n * (F_IN * F_H1 + n * F_H1
                     + F_H1 * F_H2 + n * F_H2
                     + F_H2 * F_OUT + n * F_OUT)
    bytes_accessed = (adj_t.size * 2 + x_t.size * 4 + n * n_cls * 4
                      + 4 * sum(a.size for a in (w1, b1, w2, b2, w3, b3)))

    vmem = pl.BlockSpec(memory_space=pltpu.MemorySpace.VMEM)
    out_t = pl.pallas_call(
        gcn_net_kernel,
        out_shape=jax.ShapeDtypeStruct((n_cls, n), jnp.float32),
        in_specs=[vmem] * 8,
        out_specs=vmem,
        cost_estimate=pl.CostEstimate(flops=flops,
                                      transcendentals=3 * n,
                                      bytes_accessed=bytes_accessed),
    )(adj_t, x_t, w1t, b1t, w2t, b2t, w3t, b3t)
    return out_t.T                                        # [N, num_classes]


def normalized_adjacency(edge_index, num_nodes):
    """Dense A_hat = D^-1/2 (A + I) D^-1/2 (PyG GCNConv gcn_norm)."""
    src, dst = edge_index[0], edge_index[1]
    loops = jnp.arange(num_nodes, dtype=src.dtype)
    src = jnp.concatenate([src, loops])
    dst = jnp.concatenate([dst, loops])
    deg = jnp.zeros((num_nodes,), jnp.float32).at[dst].add(1.0)
    dinv = jnp.where(deg > 0, 1.0 / jnp.sqrt(deg), 0.0)
    vals = dinv[dst] * dinv[src]
    adj = jnp.zeros((num_nodes, num_nodes), jnp.float32).at[dst, src].add(vals)
    return adj


def init_params(key):
    # GCNConv(4,16), GCNConv(16,8), GCNConv(8,2); glorot-ish deterministic init.
    dims = [(F_IN, F_H1), (F_H1, F_H2), (F_H2, F_OUT)]
    params = []
    for i, (fi, fo) in enumerate(dims):
        kw = jax.random.fold_in(key, i)
        scale = jnp.sqrt(6.0 / (fi + fo))
        w = jax.random.uniform(kw, (fi, fo), jnp.float32, -scale, scale)
        b = jnp.zeros((1, fo), jnp.float32)
        params.append((w, b))
    return params


def gcn_reference(adj, x, params):
    """Pure-JAX f32 reference of the PyTorch Net forward (node-major)."""
    h = x
    for i, (w, b) in enumerate(params):
        h = adj @ (h @ w) + b
        if i < len(params) - 1:
            h = jnp.maximum(h, 0.0)
    return jax.nn.log_softmax(h, axis=1)


if __name__ == "__main__":
    key = jax.random.PRNGKey(0)
    N, E = NUM_NODES, 512

    k_x, k_e1, k_e2, k_p = jax.random.split(key, 4)
    x = jax.random.normal(k_x, (N, F_IN), jnp.float32)
    src = jax.random.randint(k_e1, (E,), 0, N, jnp.int32)
    dst = jax.random.randint(k_e2, (E,), 0, N, jnp.int32)
    edge_index = jnp.stack([src, dst], axis=0)            # [2, E]

    adj = normalized_adjacency(edge_index, N)             # [N, N]
    params = init_params(k_p)

    out = gcn_net_forward(adj, x, params)
    out = jax.block_until_ready(out)

    assert out.shape == (N, F_OUT)
    # rows of log_softmax exp-sum to 1 (exact in f32 regardless of bf16 matmuls)
    assert jnp.allclose(jnp.sum(jnp.exp(out), axis=1), 1.0, atol=1e-4)
    # match the f32 reference up to bf16-adjacency rounding
    ref = gcn_reference(adj, x, params)
    assert jnp.allclose(out, ref, atol=1e-1), float(jnp.max(jnp.abs(out - ref)))
    print("KERNEL_OK")
</pallas_src>

<mosaic_0001>
module attributes {stable_mosaic.version = 11 : i64} {
  func.func @gcn_net_kernel(%arg0: memref<128x128xbf16, #tpu.memory_space<vmem>>, %arg1: memref<4x128xf32, #tpu.memory_space<vmem>>, %arg2: memref<16x4xf32, #tpu.memory_space<vmem>>, %arg3: memref<16x1xf32, #tpu.memory_space<vmem>>, %arg4: memref<8x16xf32, #tpu.memory_space<vmem>>, %arg5: memref<8x1xf32, #tpu.memory_space<vmem>>, %arg6: memref<2x8xf32, #tpu.memory_space<vmem>>, %arg7: memref<2x1xf32, #tpu.memory_space<vmem>>, %arg8: memref<2x128xf32, #tpu.memory_space<vmem>>) attributes {dimension_semantics = [], scalar_prefetch = 0 : i64, scratch_operands = 0 : i64, tpu.core_type = #tpu.core_type<tc>} {
    %c0 = arith.constant 0 : index
    %c0_0 = arith.constant 0 : index
    %0 = vector.load %arg0[%c0, %c0_0] : memref<128x128xbf16, #tpu.memory_space<vmem>>, vector<128x128xbf16>
    %c0_1 = arith.constant 0 : index
    %c0_2 = arith.constant 0 : index
    %1 = vector.load %arg1[%c0_1, %c0_2] : memref<4x128xf32, #tpu.memory_space<vmem>>, vector<4x128xf32>
    %c0_3 = arith.constant 0 : index
    %c0_4 = arith.constant 0 : index
    %2 = vector.load %arg2[%c0_3, %c0_4] : memref<16x4xf32, #tpu.memory_space<vmem>>, vector<16x4xf32>
    %cst = arith.constant dense<0.000000e+00> : vector<16x128xf32>
    %3 = tpu.matmul %2, %1, %cst {dimension_numbers = #tpu.dot_dimension_numbers<[1], [0], [0], [1], [0, 0, 1, 1], [], []>} : vector<16x4xf32>, vector<4x128xf32>, vector<16x128xf32> -> vector<16x128xf32>
    %4 = arith.truncf %3 : vector<16x128xf32> to vector<16x128xbf16>
    %cst_5 = arith.constant dense<0.000000e+00> : vector<16x128xf32>
    %5 = tpu.matmul %4, %0, %cst_5 {dimension_numbers = #tpu.dot_dimension_numbers<[1], [0], [0], [1], [0, 0, 1, 1], [], []>} : vector<16x128xbf16>, vector<128x128xbf16>, vector<16x128xf32> -> vector<16x128xf32>
    %c0_6 = arith.constant 0 : index
    %c0_7 = arith.constant 0 : index
    %6 = vector.load %arg3[%c0_6, %c0_7] : memref<16x1xf32, #tpu.memory_space<vmem>>, vector<16x1xf32>
    %7 = vector.broadcast %6 : vector<16x1xf32> to vector<16x128xf32>
    %8 = arith.addf %5, %7 : vector<16x128xf32>
    %cst_8 = arith.constant 0.000000e+00 : f32
    %9 = vector.broadcast %cst_8 : f32 to vector<16x128xf32>
    %10 = arith.maximumf %8, %9 : vector<16x128xf32>
    %c0_9 = arith.constant 0 : index
    %c0_10 = arith.constant 0 : index
    %11 = vector.load %arg4[%c0_9, %c0_10] : memref<8x16xf32, #tpu.memory_space<vmem>>, vector<8x16xf32>
    %cst_11 = arith.constant dense<0.000000e+00> : vector<8x128xf32>
    %12 = tpu.matmul %11, %10, %cst_11 {dimension_numbers = #tpu.dot_dimension_numbers<[1], [0], [0], [1], [0, 0, 1, 1], [], []>} : vector<8x16xf32>, vector<16x128xf32>, vector<8x128xf32> -> vector<8x128xf32>
    %13 = arith.truncf %12 : vector<8x128xf32> to vector<8x128xbf16>
    %cst_12 = arith.constant dense<0.000000e+00> : vector<8x128xf32>
    %14 = tpu.matmul %13, %0, %cst_12 {dimension_numbers = #tpu.dot_dimension_numbers<[1], [0], [0], [1], [0, 0, 1, 1], [], []>} : vector<8x128xbf16>, vector<128x128xbf16>, vector<8x128xf32> -> vector<8x128xf32>
    %c0_13 = arith.constant 0 : index
    %c0_14 = arith.constant 0 : index
    %15 = vector.load %arg5[%c0_13, %c0_14] : memref<8x1xf32, #tpu.memory_space<vmem>>, vector<8x1xf32>
    %16 = vector.broadcast %15 : vector<8x1xf32> to vector<8x128xf32>
    %17 = arith.addf %14, %16 : vector<8x128xf32>
    %cst_15 = arith.constant 0.000000e+00 : f32
    %18 = vector.broadcast %cst_15 : f32 to vector<8x128xf32>
    %19 = arith.maximumf %17, %18 : vector<8x128xf32>
    %c0_16 = arith.constant 0 : index
    %c0_17 = arith.constant 0 : index
    %20 = vector.load %arg6[%c0_16, %c0_17] : memref<2x8xf32, #tpu.memory_space<vmem>>, vector<2x8xf32>
    %cst_18 = arith.constant dense<0.000000e+00> : vector<2x128xf32>
    %21 = tpu.matmul %20, %19, %cst_18 {dimension_numbers = #tpu.dot_dimension_numbers<[1], [0], [0], [1], [0, 0, 1, 1], [], []>} : vector<2x8xf32>, vector<8x128xf32>, vector<2x128xf32> -> vector<2x128xf32>
    %22 = arith.truncf %21 : vector<2x128xf32> to vector<2x128xbf16>
    %cst_19 = arith.constant dense<0.000000e+00> : vector<2x128xf32>
    %23 = tpu.matmul %22, %0, %cst_19 {dimension_numbers = #tpu.dot_dimension_numbers<[1], [0], [0], [1], [0, 0, 1, 1], [], []>} : vector<2x128xbf16>, vector<128x128xbf16>, vector<2x128xf32> -> vector<2x128xf32>
    %c0_20 = arith.constant 0 : index
    %c0_21 = arith.constant 0 : index
    %24 = vector.load %arg7[%c0_20, %c0_21] : memref<2x1xf32, #tpu.memory_space<vmem>>, vector<2x1xf32>
    %25 = vector.broadcast %24 : vector<2x1xf32> to vector<2x128xf32>
    %26 = arith.addf %23, %25 : vector<2x128xf32>
    %cst_22 = arith.constant dense<0xFF800000> : vector<128xf32>
    %27 = vector.multi_reduction <maximumf>, %26, %cst_22 [0] : vector<2x128xf32> to vector<128xf32>
    %28 = vector.shape_cast %27 : vector<128xf32> to vector<1x128xf32>
    %29 = vector.broadcast %28 : vector<1x128xf32> to vector<2x128xf32>
    %30 = arith.subf %26, %29 : vector<2x128xf32>
    %31 = math.exp %30 : vector<2x128xf32>
    %cst_23 = arith.constant dense<0.000000e+00> : vector<128xf32>
    %32 = vector.multi_reduction <add>, %31, %cst_23 [0] : vector<2x128xf32> to vector<128xf32>
    %33 = vector.shape_cast %32 : vector<128xf32> to vector<1x128xf32>
    %34 = math.log %33 : vector<1x128xf32>
    %35 = vector.broadcast %34 : vector<1x128xf32> to vector<2x128xf32>
    %36 = arith.subf %30, %35 : vector<2x128xf32>
    %c0_24 = arith.constant 0 : index
    %c0_25 = arith.constant 0 : index
    %37 = vector.load %arg8[%c0_24, %c0_25] : memref<2x128xf32, #tpu.memory_space<vmem>>, vector<2x128xf32>
    tpu.vector_store %arg8[%c0_24, %c0_25], %36 {strides = array<i32>} : memref<2x128xf32, #tpu.memory_space<vmem>>, vector<2x128xf32>,
    return
  }
}

</mosaic_0001>

<bundles_post_ra>
// kernel: tpu_custom_call.1
= control target key start
LH: loop header
LB: loop body
LE: loop exit
PB: predicated region body
PF: predicated region fallthrough
CT: control target
= control target key end

     0   :  { %13 = vsyncpa [#allocation3], 0  ;;  %s885_s0 = inlined_call_operand.hbm [shape: bf16[128,128], index: 0, kind: input, shape index: {}]   ;;  %s886_s1 = inlined_call_operand.vmem [shape: f32[4,128], index: 1, kind: input, shape index: {}]   ;;  %s887_s2 = inlined_call_operand.vmem [shape: f32[16,4], index: 2, kind: input, shape index: {}]   ;;  %s888_s3 = inlined_call_operand.vmem [shape: f32[16,1], index: 3, kind: input, shape index: {}]   ;;  %s889_s4 = inlined_call_operand.vmem [shape: f32[8,16], index: 4, kind: input, shape index: {}]   ;;  %s890_s5 = inlined_call_operand.vmem [shape: f32[8,1], index: 5, kind: input, shape index: {}]   ;;  %s891_s6 = inlined_call_operand.vmem [shape: f32[2,8], index: 6, kind: input, shape index: {}]   ;;  %s892_s7 = inlined_call_operand.vmem [shape: f32[2,1], index: 7, kind: input, shape index: {}]   ;;  %s893_s8 = inlined_call_operand.hbm [shape: f32[2,128], index: 8, kind: output, shape index: {}]  }
   0x1   :  { %14 = vsyncpa [#allocation4], 0  ;;  %s726_s27 = smov [#allocation2]  }
   0x2   :  { %s20_s28 = sshll.u32 %s726_s27, 4  ;;  %s21_s28 = int_to_ptr.vmem [resolvable:$true] %s20_s28 }
   0x3   :  { %s690_s29 = scalar_lea.vmem %s21_s28, 1024  ;;  %p695_p1 = scmp.lt.s32.totalorder %s21_s28, %s21_s28 }
   0x4   :  { %p691_p0 = scmp.ne.s32.totalorder %s21_s28, %s690_s29  ;;  %p696_p2 = scmp.lt.s32.totalorder %s690_s29, %s690_s29 }
   0x6   :  { %p697_p3 = por %p696_p2, %p695_p1 }
   0x8   :  { %p698_p4 = pnand %p697_p3, %p691_p0 }
   0xa   :  { %701 = shalt.err (!%p698_p4)
}
   0xb   :  { %s727_s30 = smov 64   ;;  %s728_s9 = smov 4  }
   0xc   :  { %26 = dma.hbm_to_vmem [thread:$0]  %s885_s0, 1024, %s21_s28, [#allocation3], %s727_s30, %s727_s30, %s728_s9  }
   0xd   :  { %722 = dma.done.wait [#allocation3], 1024  }
   0xe   :  { %723 = vsyncadd [#allocation3], 4294966272  ;;  %v729_v0 = vmov 0.0   ;;  %vm71_vm0 = vcmask 1043456   ;;  %vm64_vm1 = vcmask 31744   ;;  %v62_v2 = vld [vmem:[%s887_s2] sm:$0xff] }
   0xf   :  { %616 = vmatprep.subr.bf16.mxu0 %v729_v0  ;;  %v61_v1 = vld [vmem:[%s886_s1] sm:$0xf]  ;;  %v63_v3 = vld [vmem:[%s887_s2 + $0x8] sm:$0xff]  ;;  %586 = vmatprep.mubr.msk.f32.mxu1 %vm64_vm1, %v62_v2  ;;  %v791_v4 = vld [vmem:[#allocation2 + $0x38] sm:$0xff]   ;;  %vm730_vm2 = vmmov 0   ;;  %v731_v13 = vmov 0  }
  0x10   :  { %584 = vmatprep.subr.msk.mxu1 %vm71_vm0, %v61_v1  ;;  %v795_v5 = vld [vmem:[#allocation2 + $0x30] sm:$0xff]   ;;  %617 = vmatpush3.bf16.msra.mxu0 %v791_v4  ;;  %v801_v6 = vld [vmem:[#allocation2 + $0x28] sm:$0xff]   ;;  %v807_v7 = vld [vmem:[#allocation2 + $0x20] sm:$0xff]   ;;  %vm255_vm3 = vcmask 130048   ;;  %vm378_vm4 = vcmask 64512   ;;  %vm499_vm5 = vcmask 1041408  }
  0x11   :  { %585 = vmatpush3.msk.msra.mxu1 %vm71_vm0, %v61_v1  ;;  %618 = vmatprep.subr.bf16.mxu0 %v729_v0  ;;  %v813_v8 = vld [vmem:[#allocation2 + $0x18] sm:$0xff]   ;;  %v819_v9 = vld [vmem:[#allocation2 + $0x10] sm:$0xff]   ;;  %v825_v10 = vld [vmem:[#allocation2 + $0x8] sm:$0xff]  }
  0x12   :  { %587 = vmatmul.mubr.msk.f32.vlgmr.msra.gmra.mxu1 %vm64_vm1, %v63_v3  ;;  %589 = vmatprep.subr.bf16.mxu1 %v729_v0  ;;  %v677_v11 = vld [vmem:[#allocation2] sm:$0xff]   ;;  %v152_v12 = vld [vmem:[%s888_s3 + $0x8] sm:$0xff] }
  0x13   :  { %590 = vmatpush3.bf16.msra.mxu1 %v791_v4  ;;  %605 = vmatprep.mubr.msk.bf16.mxu1 %vm730_vm2, %v729_v0  ;;  %v151_v14 = vld [vmem:[%s888_s3] sm:$0xff] }
  0x14   :  { %591 = vmatprep.subr.bf16.mxu1 %v729_v0  ;;  %619 = vmatpush3.bf16.msra.mxu0 %v795_v5  ;;  %v254_v28 = vld [vmem:[%s889_s4] sm:$0xff] }
  0x15   :  { %620 = vmatprep.subr.bf16.mxu0 %v729_v0  ;;  %632 = vmatprep.mubr.msk.bf16.mxu0 %vm730_vm2, %v729_v0  ;;  %v330_v29 = vld [vmem:[%s890_s5] sm:$0xff] }
  0x16   :  { %668 = vset.pattern.permute.xlu0 %v731_v13  ;;  %669 = vset.pattern.permute.xlu1 %v731_v13  ;;  %v453_v30 = vld [vmem:[%s892_s7] sm:$0x3] }
  0x17   :  { %592 = vmatpush3.bf16.msra.mxu1 %v795_v5  ;;  %160 = vperm.xlu0 %668, %v152_v12   ;;  %v377_v39 = vld [vmem:[%s891_s6] sm:$0x3]  ;;  %s732_s6 = smov [#allocation5]  }
  0x18   :  { %593 = vmatprep.subr.bf16.mxu1 %v729_v0  ;;  %621 = vmatpush3.bf16.msra.mxu0 %v801_v6  ;;  %s527_s7 = sshll.u32 %s732_s6, 4  ;;  %s528_s7 = int_to_ptr.vmem [resolvable:$true] %s527_s7 }
  0x19   :  { %622 = vmatprep.subr.bf16.mxu0 %v729_v0  ;;  %333 = vperm.xlu1 %669, %v330_v29   ;;  %s702_s24 = scalar_lea.vmem %s528_s7, 32  ;;  %p707_p6 = scmp.lt.s32.totalorder %s528_s7, %s528_s7 }
  0x1a   :  { %p703_p5 = scmp.ne.s32.totalorder %s528_s7, %s702_s24  ;;  %p708_p7 = scmp.lt.s32.totalorder %s702_s24, %s702_s24 }
  0x1b   :  { %594 = vmatpush3.bf16.msra.mxu1 %v801_v6  ;;  %155 = vperm.xlu0 %668, %v151_v14  }
  0x1c   :  { %595 = vmatprep.subr.bf16.mxu1 %v729_v0  ;;  %623 = vmatpush3.bf16.msra.mxu0 %v807_v7  ;;  %p709_p8 = por %p708_p7, %p707_p6 }
  0x1d   :  { %624 = vmatprep.subr.bf16.mxu0 %v729_v0  ;;  %456 = vperm.xlu1 %669, %v453_v30  }
  0x1e   :  { %p710_p9 = pnand %p709_p8, %p703_p5 }
  0x1f   :  { %596 = vmatpush3.bf16.msra.mxu1 %v807_v7 }
  0x20   :  { %597 = vmatprep.subr.bf16.mxu1 %v729_v0  ;;  %625 = vmatpush3.bf16.msra.mxu0 %v813_v8 }
  0x21   :  { %626 = vmatprep.subr.bf16.mxu0 %v729_v0 }
  0x23   :  { %598 = vmatpush3.bf16.msra.mxu1 %v813_v8 }
  0x24   :  { %599 = vmatprep.subr.bf16.mxu1 %v729_v0  ;;  %627 = vmatpush3.bf16.msra.mxu0 %v819_v9 }
  0x25   :  { %628 = vmatprep.subr.bf16.mxu0 %v729_v0 }
  0x27   :  { %600 = vmatpush3.bf16.msra.mxu1 %v819_v9 }
  0x28   :  { %601 = vmatprep.subr.bf16.mxu1 %v729_v0  ;;  %629 = vmatpush3.bf16.msra.mxu0 %v825_v10 }
  0x29   :  { %630 = vmatprep.subr.bf16.mxu0 %v729_v0 }
  0x2b   :  { %602 = vmatpush3.bf16.msra.mxu1 %v825_v10 }
  0x2c   :  { %603 = vmatprep.subr.bf16.mxu1 %v729_v0  ;;  %631 = vmatpush3.bf16.msra.mxu0 %v677_v11 }
  0x2d   :  { %641 = vmatprep.subr.bf16.mxu0 %v729_v0 }
  0x2f   :  { %604 = vmatpush3.bf16.msra.mxu1 %v677_v11 }
  0x30   :  { %609 = vmatprep.subr.mxu1 %v729_v0 }
  0x92   :  { %v161_v18 = vpop.permute.xlu0 %160 }
  0x94   :  { %v334_v34 = vpop.permute.xlu1 %333 }
  0x96   :  { %v156_v20 = vpop.permute.xlu0 %155 }
  0x98   :  { %v457_v45 = vpop.permute.xlu1 %456 }
  0xd2   :  { %v588_v15 = vpop.f32.mrf.mxu1 }
  0xd4   :  { %v141_v16 = vpop.f32.mrf.mxu1 }
  0xd5   :  { %v150_v17 = vpack.c.bf16 %v588_v15, %v141_v16 }
  0xd7   :  { %606 = vmatmul.mubr.bf16.vlgmr.msra.gmra.mxu1 %v150_v17 }
  0xd8   :  { %613 = vmatprep.mubr.msk.f32.mxu1 %vm730_vm2, %v729_v0 }
 0x197   :  { %v245_v19 = vpop.f32.mrf.mxu1 }
 0x198   :  { %v246_v23 = vadd.f32 %v245_v19, %v156_v20 }
 0x199   :  { %v607_v21 = vpop.f32.mrf.mxu1 }
 0x19a   :  { %v252_v27 = vmax.f32 %v246_v23, 0.0 }
 0x19b   :  { %v248_v22 = vpop.f32.mrf.mxu1 }
 0x19c   :  { %v249_v24 = vadd.f32 %v248_v22, %v161_v18 }
 0x19d   :  { %v608_v25 = vpop.f32.mrf.mxu1 }
 0x19e   :  { %v253_v26 = vmax.f32 %v249_v24, 0.0 }
 0x1a0   :  { %610 = vmatpush3.msra.mxu1 %v253_v26 }
 0x1a1   :  { %611 = vmatprep.subr.mxu1 %v729_v0 }
 0x1a2   :  { %612 = vmatpush3.msra.mxu1 %v252_v27 }
 0x1a3   :  { %614 = vmatmul.mubr.msk.f32.vlgmr.msra.gmra.mxu1 %vm255_vm3, %v254_v28  ;;  %636 = vmatprep.subr.mxu1 %v729_v0 }
 0x1a4   :  { %638 = vmatprep.mubr.msk.f32.mxu1 %vm730_vm2, %v729_v0 }
 0x263   :  { %v325_v31 = vpop.f32.mrf.mxu1 }
 0x264   :  { %v329_v32 = vpack.c.bf16 %v325_v31, %v325_v31 }
 0x265   :  { %v615_v33 = vpop.f32.mrf.mxu1 }
 0x266   :  { %633 = vmatmul.mubr.bf16.vlgmr.msra.gmra.mxu0 %v329_v32 }
 0x267   :  { %642 = vmatpush3.bf16.msra.mxu0 %v791_v4  ;;  %657 = vmatprep.mubr.msk.bf16.mxu0 %vm730_vm2, %v729_v0 }
 0x268   :  { %643 = vmatprep.subr.bf16.mxu0 %v729_v0 }
 0x26b   :  { %644 = vmatpush3.bf16.msra.mxu0 %v795_v5 }
 0x26c   :  { %645 = vmatprep.subr.bf16.mxu0 %v729_v0 }
 0x26f   :  { %646 = vmatpush3.bf16.msra.mxu0 %v801_v6 }
 0x270   :  { %647 = vmatprep.subr.bf16.mxu0 %v729_v0 }
 0x273   :  { %648 = vmatpush3.bf16.msra.mxu0 %v807_v7 }
 0x274   :  { %649 = vmatprep.subr.bf16.mxu0 %v729_v0 }
 0x277   :  { %650 = vmatpush3.bf16.msra.mxu0 %v813_v8 }
 0x278   :  { %651 = vmatprep.subr.bf16.mxu0 %v729_v0 }
 0x27b   :  { %652 = vmatpush3.bf16.msra.mxu0 %v819_v9 }
 0x27c   :  { %653 = vmatprep.subr.bf16.mxu0 %v729_v0 }
 0x27f   :  { %654 = vmatpush3.bf16.msra.mxu0 %v825_v10 }
 0x280   :  { %655 = vmatprep.subr.bf16.mxu0 %v729_v0 }
 0x283   :  { %656 = vmatpush3.bf16.msra.mxu0 %v677_v11 }
 0x326   :  { %v370_v35 = vpop.f32.mrf.mxu0 }
 0x327   :  { %v371_v36 = vadd.f32 %v370_v35, %v334_v34 }
 0x328   :  { %v634_v37 = vpop.f32.mrf.mxu0 }
 0x329   :  { %v376_v38 = vmax.f32 %v371_v36, 0.0 }
 0x32a   :  { %v373_v40 = vpop.f32.mrf.mxu0 }
 0x32b   :  { %637 = vmatpush3.msra.mxu1 %v376_v38 }
 0x32c   :  { %v635_v41 = vpop.f32.mrf.mxu0  ;;  %639 = vmatmul.mubr.msk.f32.vlgmr.msra.gmra.mxu1 %vm378_vm4, %v377_v39 }
 0x3ec   :  { %v448_v42 = vpop.f32.mrf.mxu1 }
 0x3ed   :  { %v452_v43 = vpack.c.bf16 %v448_v42, %v448_v42 }
 0x3ee   :  { %v640_v44 = vpop.f32.mrf.mxu1 }
 0x3ef   :  { %658 = vmatmul.mubr.bf16.vlgmr.msra.gmra.mxu0 %v452_v43 }
 0x4af   :  { %v493_v46 = vpop.f32.mrf.mxu0 }
 0x4b0   :  { %v494_v47 = vadd.f32 %v493_v46, %v457_v45 }
 0x4b1   :  { %v659_v48 = vpop.f32.mrf.mxu0 }
 0x4b2   :  { %v500_v49 = vsel %vm499_vm5, %v494_v47, -inf }
 0x4b3   :  { %v501_v50 = vrot.slane %v500_v49, 4  ;;  %v496_v51 = vpop.f32.mrf.mxu0 }
 0x4b5   :  { %v502_v52 = vmax.f32 %v500_v49, %v501_v50  ;;  %v660_v53 = vpop.f32.mrf.mxu0 }
 0x4b7   :  { %v503_v54 = vrot.slane %v502_v52, 2 }
 0x4b9   :  { %v504_v55 = vmax.f32 %v502_v52, %v503_v54 }
 0x4bb   :  { %v505_v56 = vrot.slane %v504_v55, 1 }
 0x4bd   :  { %v506_v57 = vmax.f32 %v504_v55, %v505_v56 }
 0x4bf   :  { %v507_v58 = vsub.f32 %v494_v47, %v506_v57 }
 0x4c1   :  { %v508_v59 = vmul.f32 1.442695, %v507_v58 }
 0x4c3   :  { %678 = vpow2.f32 %v508_v59 }
 0x4d0   :  { %v679_v60 = vpop.eup %678 }
 0x4d1   :  { %v510_v61 = vsel %vm499_vm5, %v679_v60, 0.0 }
 0x4d2   :  { %v511_v62 = vrot.slane %v510_v61, 4 }
 0x4d4   :  { %v512_v63 = vadd.f32 %v511_v62, %v510_v61 }
 0x4d6   :  { %v513_v0 = vrot.slane %v512_v63, 2 }
 0x4d8   :  { %v514_v1 = vadd.f32 %v513_v0, %v512_v63 }
 0x4da   :  { %v515_v2 = vrot.slane %v514_v1, 1 }
 0x4dc   :  { %v516_v3 = vadd.f32 %v515_v2, %v514_v1 }
 0x4de   :  { %680 = vlog2.f32 %v516_v3 }
 0x4eb   :  { %v681_v4 = vpop.eup %680 }
 0x4ec   :  { %v518_v5 = vmul.f32 0.6931472, %v681_v4 }
 0x4ee   :  { %v519_v6 = vsub.f32 %v507_v58, %v518_v5 }
 0x4f0   :  { %520 = vst [vmem:[#allocation5] sm:$0x3] %v519_v6 }
 0x4f1   :  { %713 = shalt.err (!%p710_p9)
}
 0x4f2   :  { %530 = dma.vmem_to_hbm [thread:$0]  %s528_s7, 32, %s893_s8, [#allocation4]  }
 0x4f3   :  { %724 = dma.done.wait [#allocation4], 32  }
 0x4f4   :  { %725 = vsyncadd [#allocation4], 4294967264 }
 0x4f5   :  { %534 = vsyncpa [#allocation3], 1 }
 0x4f6   :  { %535 = vsyncpa [#allocation4], 1 }

</bundles_post_ra>
